<compile_context>
chip_gen: v7x
topology: tpu7x:2x2x1
jax: 0.10.0
libtpu: 0.0.40
codegen_flags: <defaults>
</compile_context>

<pallas_src>
import functools

import jax
import jax.numpy as jnp
from jax.experimental import pallas as pl
from jax.experimental.pallas import tpu as pltpu

LANE = 128
SUBLANE = 8
TARGET_STEP_BYTES = 2 << 20   # ~2 MiB of activation+output traffic per grid step
VMEM_BUDGET = 40 << 20        # keep well under v7x's 64 MiB physical VMEM


def _cdiv(a, b):
    return (a + b - 1) // b


def _round_up(x, m):
    return _cdiv(x, m) * m


def _fused_head_kernel(x_ref, w_ref, b_ref, mean_ref, log_var_ref):
    # One MXU matmul per batch tile; mu columns live in lanes [0, out_pad),
    # log_var columns in [out_pad, 2*out_pad) of the fused weight (zero padded).
    acc = jnp.dot(x_ref[...], w_ref[...], preferred_element_type=jnp.float32)
    acc = acc + b_ref[...]                      # bias kept in f32, added in f32
    n = mean_ref.shape[-1]                      # true outp_dim
    half = w_ref.shape[-1] // 2                 # out_pad (128-aligned split)
    mean_ref[...] = acc[:, :n].astype(mean_ref.dtype)
    log_var_ref[...] = acc[:, half:half + n].astype(log_var_ref.dtype)


def prepare_params(w_mu, b_mu, w_lv, b_lv, dtype=None):
    """One-time parameter prep (do NOT call per forward step).

    Takes PyTorch-layout weights w_* (outp_dim, inp_dim), biases b_* (outp_dim,)
    and returns:
      w_fused : (inp_dim, 2*out_pad) with out_pad = round_up(outp_dim, 128);
                mu columns at lanes [0, outp_dim), log_var at [out_pad, out_pad+outp_dim)
      b_fused : (1, 2*out_pad) float32 (bias add always done in f32)
    `dtype` (e.g. jnp.bfloat16) controls the fused weight storage dtype.
    """
    outp_dim, inp_dim = w_mu.shape
    w_dtype = w_mu.dtype if dtype is None else dtype
    out_pad = _round_up(outp_dim, LANE)

    w_fused = jnp.zeros((inp_dim, 2 * out_pad), w_dtype)
    w_fused = w_fused.at[:, :outp_dim].set(w_mu.T.astype(w_dtype))
    w_fused = w_fused.at[:, out_pad:out_pad + outp_dim].set(w_lv.T.astype(w_dtype))

    b_fused = jnp.zeros((1, 2 * out_pad), jnp.float32)
    b_fused = b_fused.at[0, :outp_dim].set(b_mu.astype(jnp.float32))
    b_fused = b_fused.at[0, out_pad:out_pad + outp_dim].set(b_lv.astype(jnp.float32))
    return w_fused, b_fused


def _choose_tile(B, inp_dim, outp_dim, n_tot, x_item, out_item, w_bytes, b_bytes):
    """Batch tile (multiple of 8) sized by bytes-per-step, >=2 grid steps when
    possible (v7x megacore), clamped to a VMEM budget."""
    if B < SUBLANE:
        tb = B                              # block dim == full array dim is legal
    else:
        row_bytes = max(1, inp_dim * x_item + 2 * outp_dim * out_item)
        tb = _round_up(max(1, _cdiv(TARGET_STEP_BYTES, row_bytes)), SUBLANE)
        if B > 2 * SUBLANE:                 # keep >=2 steps for v7x's 2 TensorCores
            tb = min(tb, _round_up(_cdiv(B, 2), SUBLANE))
        tb = min(tb, _round_up(B, SUBLANE))

    # VMEM: 2x buffered x tiles + 2x weight/bias (worst case) + 2x both output
    # tiles + f32 accumulator temp.
    fixed = 2 * (w_bytes + b_bytes)
    per_row = 2 * inp_dim * x_item + 4 * outp_dim * out_item + 4 * n_tot
    if fixed < VMEM_BUDGET and per_row > 0 and tb >= SUBLANE:
        t_fit = ((VMEM_BUDGET - fixed) // per_row) // SUBLANE * SUBLANE
        if t_fit >= SUBLANE:
            tb = min(tb, t_fit)
    tb = max(1, tb)
    vmem_need = fixed + tb * per_row
    vmem_limit = int(min(64 << 20, max(16 << 20, 2 * vmem_need)))
    return tb, vmem_limit


@functools.partial(jax.jit, static_argnames=("outp_dim", "out_dtype"))
def gaussian_likelihood_head(inp, w_fused, b_fused, *, outp_dim, out_dtype=None):
    """inp: (B, inp_dim); (w_fused, b_fused) from prepare_params().
    Returns (mean, log_var), each (B, outp_dim)."""
    B, inp_dim = inp.shape
    n_tot = w_fused.shape[1]                           # 2 * out_pad
    out_dtype = inp.dtype if out_dtype is None else jnp.dtype(out_dtype)

    x_item = jnp.dtype(inp.dtype).itemsize
    out_item = jnp.dtype(out_dtype).itemsize
    w_bytes = w_fused.size * jnp.dtype(w_fused.dtype).itemsize
    b_bytes = b_fused.size * jnp.dtype(b_fused.dtype).itemsize

    tb, vmem_limit = _choose_tile(B, inp_dim, outp_dim, n_tot,
                                  x_item, out_item, w_bytes, b_bytes)
    grid = (_cdiv(B, tb),)

    # Honest scheduler hint: true (unpadded) sizes.
    flops = 2 * B * inp_dim * (2 * outp_dim)
    bytes_accessed = (B * inp_dim * x_item + w_bytes + b_bytes
                      + 2 * B * outp_dim * out_item)

    out_sds = jax.ShapeDtypeStruct((B, outp_dim), out_dtype)
    mean, log_var = pl.pallas_call(
        _fused_head_kernel,
        out_shape=(out_sds, out_sds),
        grid_spec=pltpu.PrefetchScalarGridSpec(
            num_scalar_prefetch=0,
            grid=grid,
            in_specs=[
                pl.BlockSpec((tb, inp_dim), lambda i: (i, 0)),    # activations: tiled over batch
                pl.BlockSpec((inp_dim, n_tot), lambda i: (0, 0)),  # fused weights: VMEM-resident
                pl.BlockSpec((1, n_tot), lambda i: (0, 0)),        # fused f32 bias: VMEM-resident
            ],
            out_specs=[
                pl.BlockSpec((tb, outp_dim), lambda i: (i, 0)),    # mean, exact shape
                pl.BlockSpec((tb, outp_dim), lambda i: (i, 0)),    # log_var, exact shape
            ],
        ),
        compiler_params=pltpu.CompilerParams(
            dimension_semantics=("parallel",),
            vmem_limit_bytes=vmem_limit),
        cost_estimate=pl.CostEstimate(
            flops=flops, transcendentals=0, bytes_accessed=bytes_accessed),
    )(inp, w_fused, b_fused)
    return mean, log_var


def init_params(key, inp_dim, outp_dim, dtype=jnp.float32):
    # Deterministic init mimicking nn.Linear default: U(-1/sqrt(inp_dim), 1/sqrt(inp_dim)).
    k1, k2, k3, k4 = jax.random.split(key, 4)
    bound = 1.0 / jnp.sqrt(jnp.asarray(inp_dim, dtype))
    w_mu = jax.random.uniform(k1, (outp_dim, inp_dim), dtype, -bound, bound)
    b_mu = jax.random.uniform(k2, (outp_dim,), dtype, -bound, bound)
    w_lv = jax.random.uniform(k3, (outp_dim, inp_dim), dtype, -bound, bound)
    b_lv = jax.random.uniform(k4, (outp_dim,), dtype, -bound, bound)
    return w_mu, b_mu, w_lv, b_lv


if __name__ == "__main__":
    key = jax.random.PRNGKey(0)
    k_inp, k_inp2, k_par = jax.random.split(key, 3)

    B, inp_dim, outp_dim = 8, 32, 16
    inp = jax.random.normal(k_inp, (B, inp_dim), jnp.float32)
    w_mu, b_mu, w_lv, b_lv = init_params(k_par, inp_dim, outp_dim)

    # ---- f32 path: exact check ------------------------------------------------
    w_fused, b_fused = prepare_params(w_mu, b_mu, w_lv, b_lv)          # one-time prep
    w_fused, b_fused = jax.block_until_ready((w_fused, b_fused))

    mean, log_var = gaussian_likelihood_head(inp, w_fused, b_fused, outp_dim=outp_dim)
    jax.block_until_ready((mean, log_var))

    mean_ref = inp @ w_mu.T + b_mu
    logv_ref = inp @ w_lv.T + b_lv
    assert mean.shape == (B, outp_dim) and log_var.shape == (B, outp_dim)
    assert jnp.allclose(mean, mean_ref, atol=1e-5), "mean mismatch"
    assert jnp.allclose(log_var, logv_ref, atol=1e-5), "log_var mismatch"

    # ---- bf16 weights + activations, ragged batch (exercises no-pad path) -----
    B2 = 300
    inp2 = jax.random.normal(k_inp2, (B2, inp_dim), jnp.float32)
    inp2_bf = inp2.astype(jnp.bfloat16)
    w_bf, b_bf = prepare_params(w_mu, b_mu, w_lv, b_lv, dtype=jnp.bfloat16)
    w_bf, b_bf = jax.block_until_ready((w_bf, b_bf))

    mean2, logv2 = gaussian_likelihood_head(inp2_bf, w_bf, b_bf, outp_dim=outp_dim)
    jax.block_until_ready((mean2, logv2))

    x2f = inp2_bf.astype(jnp.float32)
    mean2_ref = x2f @ w_mu.astype(jnp.bfloat16).astype(jnp.float32).T + b_mu
    logv2_ref = x2f @ w_lv.astype(jnp.bfloat16).astype(jnp.float32).T + b_lv
    assert mean2.shape == (B2, outp_dim) and logv2.shape == (B2, outp_dim)
    assert jnp.allclose(mean2.astype(jnp.float32), mean2_ref, atol=5e-2, rtol=5e-2), \
        "mean mismatch (bf16, B=300)"
    assert jnp.allclose(logv2.astype(jnp.float32), logv2_ref, atol=5e-2, rtol=5e-2), \
        "log_var mismatch (bf16, B=300)"

    print("KERNEL_OK")
</pallas_src>

<mosaic_0001>
module attributes {stable_mosaic.version = 11 : i64} {
  func.func @_fused_head_kernel(%arg0: i32, %arg1: memref<8x32xf32, #tpu.memory_space<vmem>>, %arg2: memref<32x256xf32, #tpu.memory_space<vmem>>, %arg3: memref<1x256xf32, #tpu.memory_space<vmem>>, %arg4: memref<8x16xf32, #tpu.memory_space<vmem>>, %arg5: memref<8x16xf32, #tpu.memory_space<vmem>>) attributes {dimension_semantics = [#tpu.dimension_semantics<parallel>], iteration_bounds = array<i64: 1>, scalar_prefetch = 0 : i64, scratch_operands = 0 : i64, tpu.core_type = #tpu.core_type<tc>, window_params = [{transform_indices = @transform_0, window_bounds = array<i64: 8, 32>}, {pipeline_mode = #tpu.pipeline_mode<synchronous>, transform_indices = @transform_1, window_bounds = array<i64: 32, 256>}, {pipeline_mode = #tpu.pipeline_mode<synchronous>, transform_indices = @transform_2, window_bounds = array<i64: 1, 256>}, {transform_indices = @transform_3, window_bounds = array<i64: 8, 16>}, {transform_indices = @transform_4, window_bounds = array<i64: 8, 16>}]} {
    %c0 = arith.constant 0 : index
    %c0_0 = arith.constant 0 : index
    %0 = vector.load %arg1[%c0, %c0_0] : memref<8x32xf32, #tpu.memory_space<vmem>>, vector<8x32xf32>
    %c0_1 = arith.constant 0 : index
    %c0_2 = arith.constant 0 : index
    %1 = vector.load %arg2[%c0_1, %c0_2] : memref<32x256xf32, #tpu.memory_space<vmem>>, vector<32x256xf32>
    %cst = arith.constant dense<0.000000e+00> : vector<8x256xf32>
    %2 = tpu.matmul %0, %1, %cst {dimension_numbers = #tpu.dot_dimension_numbers<[1], [0], [0], [1], [0, 0, 1, 1], [], []>} : vector<8x32xf32>, vector<32x256xf32>, vector<8x256xf32> -> vector<8x256xf32>
    %c0_3 = arith.constant 0 : index
    %c0_4 = arith.constant 0 : index
    %3 = vector.load %arg3[%c0_3, %c0_4] : memref<1x256xf32, #tpu.memory_space<vmem>>, vector<1x256xf32>
    %4 = vector.broadcast %3 : vector<1x256xf32> to vector<8x256xf32>
    %5 = arith.addf %2, %4 : vector<8x256xf32>
    %6 = vector.extract_strided_slice %5 {offsets = [0, 0], sizes = [8, 16], strides = [1, 1]} : vector<8x256xf32> to vector<8x16xf32>
    %c0_5 = arith.constant 0 : index
    %c0_6 = arith.constant 0 : index
    %7 = vector.load %arg4[%c0_5, %c0_6] : memref<8x16xf32, #tpu.memory_space<vmem>>, vector<8x16xf32>
    tpu.vector_store %arg4[%c0_5, %c0_6], %6 {strides = array<i32>} : memref<8x16xf32, #tpu.memory_space<vmem>>, vector<8x16xf32>,
    %8 = vector.extract_strided_slice %5 {offsets = [0, 128], sizes = [8, 16], strides = [1, 1]} : vector<8x256xf32> to vector<8x16xf32>
    %c0_7 = arith.constant 0 : index
    %c0_8 = arith.constant 0 : index
    %9 = vector.load %arg5[%c0_7, %c0_8] : memref<8x16xf32, #tpu.memory_space<vmem>>, vector<8x16xf32>
    tpu.vector_store %arg5[%c0_7, %c0_8], %8 {strides = array<i32>} : memref<8x16xf32, #tpu.memory_space<vmem>>, vector<8x16xf32>,
    return
  }
  func.func @transform_0(%arg0: i32) -> (i32, i32) {
    %c0_i32 = arith.constant 0 : i32
    %c0_i32_0 = arith.constant 0 : i32
    return %arg0, %c0_i32 : i32, i32
  }
  func.func @transform_1(%arg0: i32) -> (i32, i32) {
    %c0_i32 = arith.constant 0 : i32
    %c0_i32_0 = arith.constant 0 : i32
    %c0_i32_1 = arith.constant 0 : i32
    return %c0_i32, %c0_i32_0 : i32, i32
  }
  func.func @transform_2(%arg0: i32) -> (i32, i32) {
    %c0_i32 = arith.constant 0 : i32
    %c0_i32_0 = arith.constant 0 : i32
    %c0_i32_1 = arith.constant 0 : i32
    return %c0_i32, %c0_i32_0 : i32, i32
  }
  func.func @transform_3(%arg0: i32) -> (i32, i32) {
    %c0_i32 = arith.constant 0 : i32
    %c0_i32_0 = arith.constant 0 : i32
    return %arg0, %c0_i32 : i32, i32
  }
  func.func @transform_4(%arg0: i32) -> (i32, i32) {
    %c0_i32 = arith.constant 0 : i32
    %c0_i32_0 = arith.constant 0 : i32
    return %arg0, %c0_i32 : i32, i32
  }
}

</mosaic_0001>

<bundles_post_ra>
// kernel: gaussian_likelihood_head.1
= control target key start
LH: loop header
LB: loop body
LE: loop exit
PB: predicated region body
PF: predicated region fallthrough
CT: control target
= control target key end

     0   :  { %10 = vsyncpa [#allocation3], 0  ;;  %s377_s0 = inlined_call_operand.hbm [shape: f32[8,32], index: 0, kind: input, shape index: {}]   ;;  %s378_s1 = inlined_call_operand.hbm [shape: f32[32,256], index: 1, kind: input, shape index: {}]   ;;  %s379_s2 = inlined_call_operand.vmem [shape: f32[1,256], index: 2, kind: input, shape index: {}]   ;;  %s380_s3 = inlined_call_operand.hbm [shape: f32[8,16], index: 3, kind: output, shape index: {0}]   ;;  %s381_s4 = inlined_call_operand.hbm [shape: f32[8,16], index: 4, kind: output, shape index: {1}]  }
   0x1   :  { %11 = vsyncpa [#allocation6], 0 }
   0x2   :  { %12 = vsyncpa [#allocation4], 0 }
   0x3   :  { %13 = vsyncpa [#allocation9], 0  ;;  %s285_s15 = smov [#allocation2]   ;;  %s286_s17 = smov [#allocation5]  }
   0x4   :  { %s20_s16 = sshll.u32 %s285_s15, 4  ;;  %s29_s18 = sshll.u32 %s286_s17, 4  ;;  %s21_s16 = int_to_ptr.vmem [resolvable:$true] %s20_s16  ;;  %s317_s18 = int_to_ptr.vmem [resolvable:$true] %s29_s18 }
   0x5   :  { %s189_s21 = scalar_lea.hbm %s377_s0, 128 }
   0x6   :  { %p190_p0 = scmp.ne.s32.totalorder %s377_s0, %s189_s21  ;;  %p193_p1 = scmp.lt.u32.totalorder %s189_s21, %s377_s0 }
   0x8   :  { %p195_p2 = pnand %p193_p1, %p190_p0 }
   0xa   :  { %198 = shalt.err (!%p195_p2)
}
   0xb   :  { %s199_s26 = scalar_lea.vmem %s21_s16, 128  ;;  %p204_p4 = scmp.lt.s32.totalorder %s21_s16, %s21_s16 }
   0xc   :  { %p200_p3 = scmp.ne.s32.totalorder %s21_s16, %s199_s26  ;;  %p205_p5 = scmp.lt.s32.totalorder %s199_s26, %s199_s26 }
   0xe   :  { %p206_p6 = por %p205_p5, %p204_p4 }
  0x10   :  { %p207_p7 = pnand %p206_p6, %p200_p3 }
  0x12   :  { %210 = shalt.err (!%p207_p7)
}
  0x13   :  { %23 = dma.hbm_to_vmem [thread:$0]  %s377_s0, 128, %s21_s16, [#allocation3]  }
  0x14   :  { %s211_s5 = scalar_lea.hbm %s378_s1, 1024 }
  0x15   :  { %p212_p8 = scmp.ne.s32.totalorder %s378_s1, %s211_s5  ;;  %p215_p9 = scmp.lt.u32.totalorder %s211_s5, %s378_s1 }
  0x17   :  { %p217_p10 = pnand %p215_p9, %p212_p8 }
  0x19   :  { %220 = shalt.err (!%p217_p10)
}
  0x1a   :  { %s221_s10 = scalar_lea.vmem %s317_s18, 1024  ;;  %p226_p12 = scmp.lt.s32.totalorder %s317_s18, %s317_s18 }
  0x1b   :  { %p222_p11 = scmp.ne.s32.totalorder %s317_s18, %s221_s10  ;;  %p227_p13 = scmp.lt.s32.totalorder %s221_s10, %s221_s10 }
  0x1d   :  { %p228_p0 = por %p227_p13, %p226_p12 }
  0x1f   :  { %p229_p1 = pnand %p228_p0, %p222_p11 }
  0x21   :  { %232 = shalt.err (!%p229_p1)
}
  0x22   :  { %s287_s0 = smov 256   ;;  %s288_s11 = smov 16  }
  0x23   :  { %35 = dma.hbm_to_vmem [thread:$0]  %s378_s1, 1024, %s317_s18, [#allocation6], %s287_s0, %s287_s0, %s288_s11  }
  0x24   :  { %277 = dma.done.wait [#allocation3], 128  }
  0x25   :  { %278 = vsyncadd [#allocation3], 4294967168 }
  0x26   :  { %279 = dma.done.wait [#allocation6], 1024  }
  0x27   :  { %280 = vsyncadd [#allocation6], 4294966272  ;;  %v289_v0 = vmov 0.0   ;;  %v46_v1 = vld [vmem:[#allocation5 + $0x8] sm:$0xff]  ;;  %v48_v2 = vld [vmem:[#allocation5 + $0x18] sm:$0xff]  ;;  %vm65_vm0 = vcmask 261120   ;;  %v55_v14 = vlaneseq }
  0x28   :  { %133 = vmatprep.mubr.f32.mxu0 %v289_v0  ;;  %v45_v3 = vld [vmem:[#allocation5] sm:$0xff]  ;;  %v174_v4 = vpack.c.bf16 %v48_v2, %v46_v1  ;;  %v47_v5 = vld [vmem:[#allocation5 + $0x10] sm:$0xff]  ;;  %v50_v6 = vld [vmem:[#allocation5 + $0x28] sm:$0xff]  ;;  %s290_s15 = smov [#allocation7]   ;;  %s291_s17 = smov [#allocation8]   ;;  %vm140_vm1 = vcmask 130048  }
  0x29   :  { %v52_v7 = vld [vmem:[#allocation5 + $0x38] sm:$0xff]  ;;  %v176_v8 = vpack.c.bf16 %v47_v5, %v45_v3  ;;  %v49_v10 = vld [vmem:[#allocation5 + $0x20] sm:$0xff]  ;;  %v51_v11 = vld [vmem:[#allocation5 + $0x30] sm:$0xff]  ;;  %v56_v15 = vshrl.u32 %v55_v14, 7  ;;  %s149_s16 = sshll.u32 %s290_s15, 4  ;;  %s159_s18 = sshll.u32 %s291_s17, 4  ;;  %s150_s16 = int_to_ptr.vmem [resolvable:$true] %s149_s16  ;;  %s160_s18 = int_to_ptr.vmem [resolvable:$true] %s159_s18 }
  0x2a   :  { %v178_v9 = vpack.c.bf16 %v52_v7, %v50_v6  ;;  %175 = vmatprep.subr.bf16.mxu0 %v174_v4  ;;  %v180_v12 = vpack.c.bf16 %v51_v11, %v49_v10  ;;  %v44_v13 = vld [vmem:[#allocation2] sm:$0xff]  ;;  %s233_s19 = scalar_lea.vmem %s150_s16, 128  ;;  %p238_p3 = scmp.lt.s32.totalorder %s150_s16, %s150_s16 }
  0x2b   :  { %177 = vmatpush1.bf16.msra.mxu0 %v176_v8  ;;  %v57_v16 = vsub.s32 0, %v56_v15  ;;  %v53_v17 = vld [vmem:[%s379_s2] sm:$0x3]  ;;  %v61_v18 = vsub.s32 1, %v56_v15  ;;  %p234_p2 = scmp.ne.s32.totalorder %s150_s16, %s233_s19  ;;  %p239_p4 = scmp.lt.s32.totalorder %s233_s19, %s233_s19 }
  0x2c   :  { %179 = vmatprep.subr.bf16.mxu0 %v178_v9 }
  0x2d   :  { %v58_v19 = vrot.slane %v53_v17, %v57_v16  ;;  %v62_v20 = vrot.slane %v53_v17, %v61_v18  ;;  %p240_p5 = por %p239_p4, %p238_p3 }
  0x2f   :  { %181 = vmatpush1.bf16.msra.mxu0 %v180_v12  ;;  %p241_p6 = pnand %p240_p5, %p234_p2 }
  0x32   :  { %173 = vmatmul.mubr.msk.f32.vlgmr.msra.gmra.mrb[0].mxu0 %vm65_vm0, %v44_v13 }
 0x105   :  { %v135_v21 = vpop.f32.mrb[0].mxu0 }
 0x106   :  { %v136_v22 = vadd.f32 %v135_v21, %v58_v19  ;;  %v137_v23 = vpop.f32.mrb[1].mxu0 }
 0x107   :  { %v138_v24 = vadd.f32 %v137_v23, %v62_v20 }
 0x108   :  { %141 = vst.msk [vmem:[#allocation7] sm:$0xff] %vm140_vm1, %v136_v22 }
 0x109   :  { %244 = shalt.err (!%p241_p6)
}
 0x10a   :  { %s245_s21 = scalar_lea.hbm %s380_s3, 128 }
 0x10b   :  { %p246_p7 = scmp.ne.s32.totalorder %s380_s3, %s245_s21  ;;  %p249_p8 = scmp.lt.u32.totalorder %s245_s21, %s380_s3 }
 0x10d   :  { %p251_p9 = pnand %p249_p8, %p246_p7 }
 0x10f   :  { %254 = shalt.err (!%p251_p9)
}
 0x110   :  { %152 = dma.vmem_to_hbm [thread:$0]  %s150_s16, 128, %s380_s3, [#allocation4]   ;;  %142 = vst.msk [vmem:[#allocation8] sm:$0xff] %vm140_vm1, %v138_v24 }
 0x111   :  { %s255_s28 = scalar_lea.vmem %s160_s18, 128  ;;  %p260_p11 = scmp.lt.s32.totalorder %s160_s18, %s160_s18 }
 0x112   :  { %p256_p10 = scmp.ne.s32.totalorder %s160_s18, %s255_s28  ;;  %p261_p12 = scmp.lt.s32.totalorder %s255_s28, %s255_s28 }
 0x114   :  { %p262_p13 = por %p261_p12, %p260_p11 }
 0x116   :  { %p263_p0 = pnand %p262_p13, %p256_p10 }
 0x118   :  { %266 = shalt.err (!%p263_p0)
}
 0x119   :  { %s267_s5 = scalar_lea.hbm %s381_s4, 128 }
 0x11a   :  { %p268_p1 = scmp.ne.s32.totalorder %s381_s4, %s267_s5  ;;  %p271_p2 = scmp.lt.u32.totalorder %s267_s5, %s381_s4 }
 0x11c   :  { %p273_p3 = pnand %p271_p2, %p268_p1 }
 0x11e   :  { %276 = shalt.err (!%p273_p3)
}
 0x11f   :  { %162 = dma.vmem_to_hbm [thread:$0]  %s160_s18, 128, %s381_s4, [#allocation9]  }
 0x120   :  { %281 = dma.done.wait [#allocation4], 128  }
 0x121   :  { %282 = vsyncadd [#allocation4], 4294967168 }
 0x122   :  { %283 = dma.done.wait [#allocation9], 128  }
 0x123   :  { %284 = vsyncadd [#allocation9], 4294967168 }
 0x124   :  { %169 = vsyncpa [#allocation3], 1 }
 0x125   :  { %170 = vsyncpa [#allocation6], 1 }
 0x126   :  { %171 = vsyncpa [#allocation4], 1 }
 0x127   :  { %172 = vsyncpa [#allocation9], 1 }

</bundles_post_ra>
